<compile_context>
chip_gen: v7x
topology: tpu7x:2x2x1
jax: 0.10.0
libtpu: 0.0.40
codegen_flags: <defaults>
</compile_context>

<pallas_src>
import jax
import jax.numpy as jnp
import numpy as np
from jax import lax
from jax.experimental import pallas as pl
from jax.experimental.pallas import tpu as pltpu

NUM_CLASSES = 10
TEMPERATURE = 1.0   # == 1 in the default config, so no divide in the kernel.
EPS = 1e-6
_PAD_SQDIST = 1e20  # squared-distance bias for padded reference cols -> exp underflows to 0


def _round_up(v, m):
    return ((int(v) + m - 1) // m) * m


def _vmem_capacity_bytes():
    try:
        cap = getattr(pltpu.get_tpu_info(), "vmem_capacity_bytes", None)
        if cap:
            return int(cap)
    except Exception:
        pass
    return 64 * 2**20  # conservative (v7x-sized) fallback


def _num_tensorcores():
    n = None
    try:
        info = pltpu.get_tpu_info()
        for name in ("num_cores", "core_count", "tensorcores_per_chip", "num_tensorcores"):
            v = getattr(info, name, None)
            try:
                if v is not None and int(v) > 0:
                    n = int(v)
                    break
            except Exception:
                pass
    except Exception:
        pass
    if n is None:
        try:
            v = getattr(jax.devices()[0], "num_cores", None)
            if v is not None and int(v) > 0:
                n = int(v)
        except Exception:
            pass
    return max(1, min(int(n or 1), 4))


def _vmem_estimate(tm, tn, d_pad, feat_bytes, xr_bufs):
    """Rough VMEM footprint: tiles (double-buffered) + live f32 temporaries."""
    lane = lambda n: _round_up(n, 128)
    est = xr_bufs * d_pad * tn * feat_bytes          # x_ref^T tile buffers
    est += 2 * tm * lane(d_pad) * feat_bytes         # x tile buffers
    est += 2 * 2 * 8 * tn * 4                        # (1, tn) sq_r / y_r tiles
    est += 4 * tm * tn * 4                           # live (tm, tn) f32 temporaries
    est += 24 * tm * 128 * 4                         # (tm,1) blocks, scratch, slack
    return est


def _select_tiles(M, N, d_pad, feat_bytes, tm_req, tn_req, xr_bufs):
    cap = _vmem_capacity_bytes()
    n_tc = _num_tensorcores()
    vmem_limit = int(min(cap * 3 // 4, 96 * 2**20))
    budget = int(vmem_limit * 0.8)

    m8 = _round_up(max(M, 1), 8)
    if tm_req is not None:
        tm = _round_up(min(int(tm_req), m8), 8)
    else:
        tm_cap = 256
        blocks_i = -(-m8 // tm_cap)
        if m8 >= n_tc * 8:
            # Keep every TensorCore busy on the parallel M axis (v7x megacore),
            # but no more blocks than needed (each extra i-block re-streams x_ref).
            blocks_i = max(blocks_i, n_tc)
        tm = _round_up(-(-m8 // blocks_i), 8)

    n128 = _round_up(max(N, 1), 128)
    if tn_req is not None:
        tn = _round_up(min(int(tn_req), n128), 128)
    else:
        tn = min(4096 if cap >= 96 * 2**20 else 2048, n128)
        tn = _round_up(tn, 128)
        while tn > 256 and _vmem_estimate(tm, tn, d_pad, feat_bytes, xr_bufs) > budget:
            tn = _round_up(tn // 2, 128)
    return tm, tn, vmem_limit


def _ask_loss_kernel(xq_ref, sqx_ref, yq_ref, xrt_ref, sqr_ref, yr_ref,
                     loss_ref, m_sc, l_sc, num_sc):
    # xq_ref : (tm, Dp)  query features (f32 or bf16)
    # sqx_ref: (tm, 1)   precomputed ||x_i||^2 (f32)
    # yq_ref : (tm, 1)   int32 query labels
    # xrt_ref: (Dp, tn)  reference features, pre-transposed (lane-dense tn)
    # sqr_ref: (1, tn)   precomputed ||r_j||^2 (padded cols hold _PAD_SQDIST)
    # yr_ref : (1, tn)   int32 reference labels (padded cols hold -1)
    # loss_ref: (tm, 1)  per-sample -log(soft) output (written at last N step)
    # m_sc/l_sc/num_sc: (tm, 1) online-softmax running max / denom / matched numerator
    j = pl.program_id(1)

    @pl.when(j == 0)
    def _():
        m_sc[...] = jnp.full_like(m_sc, -jnp.inf)
        l_sc[...] = jnp.zeros_like(l_sc)
        num_sc[...] = jnp.zeros_like(num_sc)

    x = xq_ref[...]                                   # (tm, Dp)
    xr_t = xrt_ref[...]                               # (Dp, tn)

    # Pairwise squared L2 via hoisted norms + MXU inner product in natural
    # (tm, Dp) x (Dp, tn) layout; clamp against cancellation before the sqrt.
    prec = lax.Precision.HIGHEST if x.dtype == jnp.float32 else None
    cross = lax.dot_general(x, xr_t, (((1,), (0,)), ((), ())),
                            preferred_element_type=jnp.float32,
                            precision=prec)                           # (tm, tn) f32
    d2 = jnp.maximum(sqx_ref[...] + sqr_ref[...] - 2.0 * cross, 0.0)
    score = -jnp.sqrt(d2)                                             # T == 1

    # Online softmax update (running max / denominator).
    m_prev = m_sc[...]
    m_new = jnp.maximum(m_prev, jnp.max(score, axis=1, keepdims=True))
    alpha = jnp.exp(m_prev - m_new)
    e = jnp.exp(score - m_new)                                        # (tm, tn)

    # Matched-class numerator: masked row-sum on int labels (no one-hot matmul).
    matched = jnp.where(yq_ref[...] == yr_ref[...], e, 0.0)           # (tm, tn)

    l_sc[...] = alpha * l_sc[...] + jnp.sum(e, axis=1, keepdims=True)
    num_sc[...] = alpha * num_sc[...] + jnp.sum(matched, axis=1, keepdims=True)
    m_sc[...] = m_new

    @pl.when(j == pl.num_programs(1) - 1)
    def _():
        # soft_i = sum_{y_ref==y_i} p_ij + eps ; loss_i = -log(soft_i)
        loss_ref[...] = -jnp.log(num_sc[...] / l_sc[...] + EPS)


def ask_loss_pallas(x, x_ref, y, y_ref, *, reduction="mean",
                    feature_dtype=jnp.bfloat16, tm=None, tn=None,
                    xr_buffer_count=2):
    """x: (M, D) float, x_ref: (N, D) float, y: (M,) int, y_ref: (N,) int.

    feature_dtype controls the dtype of the streamed features fed to the MXU
    (bf16 by default for HBM/MXU throughput); norms, sqrt/exp and accumulators
    are always f32. Use feature_dtype=jnp.float32 for exact f32 semantics.
    """
    M, D = x.shape
    N, D2 = x_ref.shape
    assert D == D2, "query / reference feature dims must match"

    feat_dtype = jnp.dtype(feature_dtype)
    feat_bytes = feat_dtype.itemsize
    d_pad = _round_up(D, 16)
    xr_bufs = int(xr_buffer_count) if xr_buffer_count else 2

    tm_, tn_, vmem_limit = _select_tiles(M, N, d_pad, feat_bytes, tm, tn, xr_bufs)
    m_pad = _round_up(M, tm_)
    n_pad = _round_up(N, tn_)

    x32 = x.astype(jnp.float32)
    xr32 = x_ref.astype(jnp.float32)

    # Hoisted f32 squared norms (padded reference cols get a huge bias -> exp == 0;
    # padded query rows are sliced off before the final reduction).
    sq_x = jnp.zeros((m_pad, 1), jnp.float32).at[:M, 0].set(jnp.sum(x32 * x32, axis=1))
    sq_r = jnp.full((1, n_pad), _PAD_SQDIST, jnp.float32).at[0, :N].set(
        jnp.sum(xr32 * xr32, axis=1))

    # Streamed features: queries as (M_pad, D_pad); references transposed once to
    # (D_pad, N_pad) so kernel tiles are lane-dense and the MXU sees (tm,D)x(D,tn).
    # Skip the padding copy when shapes are already tile-aligned.
    if m_pad == M and d_pad == D:
        x_p = x32.astype(feat_dtype)
    else:
        x_p = jnp.zeros((m_pad, d_pad), feat_dtype).at[:M, :D].set(x32.astype(feat_dtype))
    if n_pad == N and d_pad == D:
        xr_t = xr32.astype(feat_dtype).T
    else:
        xr_t = jnp.zeros((d_pad, n_pad), feat_dtype).at[:D, :N].set(
            xr32.astype(feat_dtype).T)

    y_q = jnp.zeros((m_pad, 1), jnp.int32).at[:M, 0].set(y.astype(jnp.int32))
    y_r = jnp.full((1, n_pad), -1, jnp.int32).at[0, :N].set(y_ref.astype(jnp.int32))

    grid = (m_pad // tm_, n_pad // tn_)

    xr_spec_kwargs = {}
    if xr_bufs != 2:
        # Deeper buffering of the dominant stream (e.g. v5e when the DMA is exposed).
        xr_spec_kwargs["pipeline_mode"] = pl.Buffered(xr_bufs)
    xr_spec = pl.BlockSpec((d_pad, tn_), lambda i, j: (0, j), **xr_spec_kwargs)

    per_sample = pl.pallas_call(
        _ask_loss_kernel,
        out_shape=jax.ShapeDtypeStruct((m_pad, 1), jnp.float32),
        grid_spec=pltpu.PrefetchScalarGridSpec(
            num_scalar_prefetch=0,
            grid=grid,
            in_specs=[
                pl.BlockSpec((tm_, d_pad), lambda i, j: (i, 0)),   # x
                pl.BlockSpec((tm_, 1), lambda i, j: (i, 0)),       # ||x||^2
                pl.BlockSpec((tm_, 1), lambda i, j: (i, 0)),       # y
                xr_spec,                                           # x_ref^T tile
                pl.BlockSpec((1, tn_), lambda i, j: (0, j)),       # ||r||^2 tile
                pl.BlockSpec((1, tn_), lambda i, j: (0, j)),       # y_ref tile
            ],
            out_specs=pl.BlockSpec((tm_, 1), lambda i, j: (i, 0)),
            scratch_shapes=[
                pltpu.VMEM((tm_, 1), jnp.float32),   # running max
                pltpu.VMEM((tm_, 1), jnp.float32),   # running denominator
                pltpu.VMEM((tm_, 1), jnp.float32),   # running matched numerator
            ],
        ),
        compiler_params=pltpu.CompilerParams(
            dimension_semantics=("parallel", "arbitrary"),
            vmem_limit_bytes=vmem_limit,
        ),
    )(x_p, sq_x, y_q, xr_t, sq_r, y_r)

    per_sample = per_sample[:M, 0]
    if reduction == "mean":
        return jnp.mean(per_sample)
    if reduction == "sum":
        return jnp.sum(per_sample)
    return per_sample


def ask_loss_reference(x, x_ref, y, y_ref):
    """Pure-JAX reference mirroring the PyTorch forward (default config), f32."""
    x = x.astype(jnp.float32)
    x_ref = x_ref.astype(jnp.float32)
    sq_x = jnp.sum(x * x, axis=1)[:, None]
    sq_r = jnp.sum(x_ref * x_ref, axis=1)[None, :]
    cross = jnp.matmul(x, x_ref.T, precision=lax.Precision.HIGHEST)
    d2 = jnp.maximum(sq_x - 2.0 * cross + sq_r, 0.0)
    score = -jnp.sqrt(d2) / TEMPERATURE
    p = jax.nn.softmax(score, axis=1)
    oh = jax.nn.one_hot(y_ref, NUM_CLASSES, dtype=jnp.float32)
    soft = jnp.matmul(p, oh, precision=lax.Precision.HIGHEST) + EPS
    log_soft = jnp.log(soft)
    return -jnp.mean(log_soft[jnp.arange(x.shape[0]), y])


if __name__ == "__main__":
    # Test 1: tiny single-tile problem, exact f32 streaming path, auto tiling.
    k1, k2, k3, k4 = jax.random.split(jax.random.PRNGKey(0), 4)
    M, N, D = 8, 16, 32
    x = jax.random.normal(k1, (M, D), dtype=jnp.float32)
    xr = jax.random.normal(k2, (N, D), dtype=jnp.float32)
    y = jax.random.randint(k3, (M,), 0, NUM_CLASSES, dtype=jnp.int32)
    yr = jax.random.randint(k4, (N,), 0, NUM_CLASSES, dtype=jnp.int32)

    loss = ask_loss_pallas(x, xr, y, yr, feature_dtype=jnp.float32)
    jax.block_until_ready(loss)
    ref = ask_loss_reference(x, xr, y, yr)
    np.testing.assert_allclose(np.asarray(loss), np.asarray(ref), rtol=1e-4, atol=1e-4)

    # Test 2: multi-tile grid (online softmax across N tiles + M/N padding), f32.
    k5, k6, k7, k8 = jax.random.split(jax.random.PRNGKey(1), 4)
    M2, N2 = 24, 300
    x2 = jax.random.normal(k5, (M2, D), dtype=jnp.float32)
    xr2 = jax.random.normal(k6, (N2, D), dtype=jnp.float32)
    y2 = jax.random.randint(k7, (M2,), 0, NUM_CLASSES, dtype=jnp.int32)
    yr2 = jax.random.randint(k8, (N2,), 0, NUM_CLASSES, dtype=jnp.int32)

    loss2 = ask_loss_pallas(x2, xr2, y2, yr2, feature_dtype=jnp.float32, tm=8, tn=128)
    jax.block_until_ready(loss2)
    ref2 = ask_loss_reference(x2, xr2, y2, yr2)
    np.testing.assert_allclose(np.asarray(loss2), np.asarray(ref2), rtol=1e-4, atol=1e-4)

    # Test 3: auto tiling with D padding (72 -> 80); f32 tight, then default bf16
    # feature streaming at a looser tolerance.
    k9, kA, kB, kC = jax.random.split(jax.random.PRNGKey(2), 4)
    M3, N3, D3 = 64, 1000, 72
    x3 = jax.random.normal(k9, (M3, D3), dtype=jnp.float32)
    xr3 = jax.random.normal(kA, (N3, D3), dtype=jnp.float32)
    y3 = jax.random.randint(kB, (M3,), 0, NUM_CLASSES, dtype=jnp.int32)
    yr3 = jax.random.randint(kC, (N3,), 0, NUM_CLASSES, dtype=jnp.int32)

    ref3 = ask_loss_reference(x3, xr3, y3, yr3)
    loss3_f32 = ask_loss_pallas(x3, xr3, y3, yr3, feature_dtype=jnp.float32)
    jax.block_until_ready(loss3_f32)
    np.testing.assert_allclose(np.asarray(loss3_f32), np.asarray(ref3), rtol=1e-4, atol=1e-4)

    loss3_bf16 = ask_loss_pallas(x3, xr3, y3, yr3)   # default: bf16 feature streaming
    jax.block_until_ready(loss3_bf16)
    np.testing.assert_allclose(np.asarray(loss3_bf16), np.asarray(ref3), rtol=5e-2, atol=5e-2)

    print("KERNEL_OK")
</pallas_src>

<mosaic_0001>
module attributes {stable_mosaic.version = 11 : i64} {
  func.func @_ask_loss_kernel(%arg0: i32, %arg1: i32, %arg2: memref<8x32xf32, #tpu.memory_space<vmem>>, %arg3: memref<8x1xf32, #tpu.memory_space<vmem>>, %arg4: memref<8x1xi32, #tpu.memory_space<vmem>>, %arg5: memref<32x128xf32, #tpu.memory_space<vmem>>, %arg6: memref<1x128xf32, #tpu.memory_space<vmem>>, %arg7: memref<1x128xi32, #tpu.memory_space<vmem>>, %arg8: memref<8x1xf32, #tpu.memory_space<vmem>>, %arg9: memref<8x1xf32, #tpu.memory_space<vmem>>, %arg10: memref<8x1xf32, #tpu.memory_space<vmem>>, %arg11: memref<8x1xf32, #tpu.memory_space<vmem>>) attributes {dimension_semantics = [#tpu.dimension_semantics<parallel>, #tpu.dimension_semantics<arbitrary>], iteration_bounds = array<i64: 1, 1>, scalar_prefetch = 0 : i64, scratch_operands = 3 : i64, tpu.core_type = #tpu.core_type<tc>, window_params = [{transform_indices = @transform_0, window_bounds = array<i64: 8, 32>}, {transform_indices = @transform_1, window_bounds = array<i64: 8, 1>}, {transform_indices = @transform_2, window_bounds = array<i64: 8, 1>}, {transform_indices = @transform_3, window_bounds = array<i64: 32, 128>}, {transform_indices = @transform_4, window_bounds = array<i64: 1, 128>}, {transform_indices = @transform_5, window_bounds = array<i64: 1, 128>}, {transform_indices = @transform_6, window_bounds = array<i64: 8, 1>}]} {
    %c0_i32 = arith.constant 0 : i32
    %0 = arith.cmpi eq, %arg1, %c0_i32 : i32
    %1 = arith.extui %0 : i1 to i32
    %c0_i32_0 = arith.constant 0 : i32
    %2 = arith.cmpi ne, %1, %c0_i32_0 : i32
    scf.if %2 {
      %cst_33 = arith.constant 0xFF800000 : f32
      %51 = vector.broadcast %cst_33 : f32 to vector<8x1xf32>
      %c0_34 = arith.constant 0 : index
      %c0_35 = arith.constant 0 : index
      %52 = vector.load %arg9[%c0_34, %c0_35] : memref<8x1xf32, #tpu.memory_space<vmem>>, vector<8x1xf32>
      tpu.vector_store %arg9[%c0_34, %c0_35], %51 {strides = array<i32>} : memref<8x1xf32, #tpu.memory_space<vmem>>, vector<8x1xf32>,
      %cst_36 = arith.constant 0.000000e+00 : f32
      %53 = vector.broadcast %cst_36 : f32 to vector<8x1xf32>
      %c0_37 = arith.constant 0 : index
      %c0_38 = arith.constant 0 : index
      %54 = vector.load %arg10[%c0_37, %c0_38] : memref<8x1xf32, #tpu.memory_space<vmem>>, vector<8x1xf32>
      tpu.vector_store %arg10[%c0_37, %c0_38], %53 {strides = array<i32>} : memref<8x1xf32, #tpu.memory_space<vmem>>, vector<8x1xf32>,
      %cst_39 = arith.constant 0.000000e+00 : f32
      %55 = vector.broadcast %cst_39 : f32 to vector<8x1xf32>
      %c0_40 = arith.constant 0 : index
      %c0_41 = arith.constant 0 : index
      %56 = vector.load %arg11[%c0_40, %c0_41] : memref<8x1xf32, #tpu.memory_space<vmem>>, vector<8x1xf32>
      tpu.vector_store %arg11[%c0_40, %c0_41], %55 {strides = array<i32>} : memref<8x1xf32, #tpu.memory_space<vmem>>, vector<8x1xf32>,
    } else {
    }
    %c0 = arith.constant 0 : index
    %c0_1 = arith.constant 0 : index
    %3 = vector.load %arg2[%c0, %c0_1] : memref<8x32xf32, #tpu.memory_space<vmem>>, vector<8x32xf32>
    %c0_2 = arith.constant 0 : index
    %c0_3 = arith.constant 0 : index
    %4 = vector.load %arg5[%c0_2, %c0_3] : memref<32x128xf32, #tpu.memory_space<vmem>>, vector<32x128xf32>
    %cst = arith.constant dense<0.000000e+00> : vector<8x128xf32>
    %5 = tpu.matmul %3, %4, %cst {dimension_numbers = #tpu.dot_dimension_numbers<[1], [0], [0], [1], [0, 0, 1, 1], [], []>, precision = #tpu.contract_precision<fp32>} : vector<8x32xf32>, vector<32x128xf32>, vector<8x128xf32> -> vector<8x128xf32>
    %c0_4 = arith.constant 0 : index
    %c0_5 = arith.constant 0 : index
    %6 = vector.load %arg3[%c0_4, %c0_5] : memref<8x1xf32, #tpu.memory_space<vmem>>, vector<8x1xf32>
    %c0_6 = arith.constant 0 : index
    %c0_7 = arith.constant 0 : index
    %7 = vector.load %arg6[%c0_6, %c0_7] : memref<1x128xf32, #tpu.memory_space<vmem>>, vector<1x128xf32>
    %8 = vector.broadcast %6 : vector<8x1xf32> to vector<8x128xf32>
    %9 = vector.broadcast %7 : vector<1x128xf32> to vector<8x128xf32>
    %10 = arith.addf %8, %9 : vector<8x128xf32>
    %cst_8 = arith.constant 2.000000e+00 : f32
    %11 = vector.broadcast %cst_8 : f32 to vector<8x128xf32>
    %12 = arith.mulf %11, %5 : vector<8x128xf32>
    %13 = arith.subf %10, %12 : vector<8x128xf32>
    %cst_9 = arith.constant 0.000000e+00 : f32
    %14 = vector.broadcast %cst_9 : f32 to vector<8x128xf32>
    %15 = arith.maximumf %13, %14 : vector<8x128xf32>
    %16 = math.sqrt %15 : vector<8x128xf32>
    %cst_10 = arith.constant 0.000000e+00 : f32
    %17 = vector.broadcast %cst_10 : f32 to vector<8x128xf32>
    %18 = arith.subf %17, %16 : vector<8x128xf32>
    %c0_11 = arith.constant 0 : index
    %c0_12 = arith.constant 0 : index
    %19 = vector.load %arg9[%c0_11, %c0_12] : memref<8x1xf32, #tpu.memory_space<vmem>>, vector<8x1xf32>
    %cst_13 = arith.constant dense<0xFF800000> : vector<8xf32>
    %20 = vector.multi_reduction <maximumf>, %18, %cst_13 [1] : vector<8x128xf32> to vector<8xf32>
    %21 = vector.shape_cast %20 : vector<8xf32> to vector<8x1xf32>
    %22 = arith.maximumf %19, %21 : vector<8x1xf32>
    %23 = arith.subf %19, %22 : vector<8x1xf32>
    %24 = math.exp %23 : vector<8x1xf32>
    %25 = vector.broadcast %22 : vector<8x1xf32> to vector<8x128xf32>
    %26 = arith.subf %18, %25 : vector<8x128xf32>
    %27 = math.exp %26 : vector<8x128xf32>
    %c0_14 = arith.constant 0 : index
    %c0_15 = arith.constant 0 : index
    %28 = vector.load %arg4[%c0_14, %c0_15] : memref<8x1xi32, #tpu.memory_space<vmem>>, vector<8x1xi32>
    %c0_16 = arith.constant 0 : index
    %c0_17 = arith.constant 0 : index
    %29 = vector.load %arg7[%c0_16, %c0_17] : memref<1x128xi32, #tpu.memory_space<vmem>>, vector<1x128xi32>
    %30 = vector.broadcast %28 : vector<8x1xi32> to vector<8x128xi32>
    %31 = vector.broadcast %29 : vector<1x128xi32> to vector<8x128xi32>
    %32 = arith.cmpi eq, %30, %31 : vector<8x128xi32>
    %cst_18 = arith.constant 0.000000e+00 : f32
    %33 = vector.broadcast %cst_18 : f32 to vector<8x128xf32>
    %34 = arith.select %32, %27, %33 : vector<8x128xi1>, vector<8x128xf32>
    %c0_19 = arith.constant 0 : index
    %c0_20 = arith.constant 0 : index
    %35 = vector.load %arg10[%c0_19, %c0_20] : memref<8x1xf32, #tpu.memory_space<vmem>>, vector<8x1xf32>
    %36 = arith.mulf %24, %35 : vector<8x1xf32>
    %cst_21 = arith.constant dense<0.000000e+00> : vector<8xf32>
    %37 = vector.multi_reduction <add>, %27, %cst_21 [1] : vector<8x128xf32> to vector<8xf32>
    %38 = vector.shape_cast %37 : vector<8xf32> to vector<8x1xf32>
    %39 = arith.addf %36, %38 : vector<8x1xf32>
    %c0_22 = arith.constant 0 : index
    %c0_23 = arith.constant 0 : index
    %40 = vector.load %arg10[%c0_22, %c0_23] : memref<8x1xf32, #tpu.memory_space<vmem>>, vector<8x1xf32>
    tpu.vector_store %arg10[%c0_22, %c0_23], %39 {strides = array<i32>} : memref<8x1xf32, #tpu.memory_space<vmem>>, vector<8x1xf32>,
    %c0_24 = arith.constant 0 : index
    %c0_25 = arith.constant 0 : index
    %41 = vector.load %arg11[%c0_24, %c0_25] : memref<8x1xf32, #tpu.memory_space<vmem>>, vector<8x1xf32>
    %42 = arith.mulf %24, %41 : vector<8x1xf32>
    %cst_26 = arith.constant dense<0.000000e+00> : vector<8xf32>
    %43 = vector.multi_reduction <add>, %34, %cst_26 [1] : vector<8x128xf32> to vector<8xf32>
    %44 = vector.shape_cast %43 : vector<8xf32> to vector<8x1xf32>
    %45 = arith.addf %42, %44 : vector<8x1xf32>
    %c0_27 = arith.constant 0 : index
    %c0_28 = arith.constant 0 : index
    %46 = vector.load %arg11[%c0_27, %c0_28] : memref<8x1xf32, #tpu.memory_space<vmem>>, vector<8x1xf32>
    tpu.vector_store %arg11[%c0_27, %c0_28], %45 {strides = array<i32>} : memref<8x1xf32, #tpu.memory_space<vmem>>, vector<8x1xf32>,
    %c0_29 = arith.constant 0 : index
    %c0_30 = arith.constant 0 : index
    %47 = vector.load %arg9[%c0_29, %c0_30] : memref<8x1xf32, #tpu.memory_space<vmem>>, vector<8x1xf32>
    tpu.vector_store %arg9[%c0_29, %c0_30], %22 {strides = array<i32>} : memref<8x1xf32, #tpu.memory_space<vmem>>, vector<8x1xf32>,
    %c0_i32_31 = arith.constant 0 : i32
    %48 = arith.cmpi eq, %arg1, %c0_i32_31 : i32
    %49 = arith.extui %48 : i1 to i32
    %c0_i32_32 = arith.constant 0 : i32
    %50 = arith.cmpi ne, %49, %c0_i32_32 : i32
    scf.if %50 {
      %c0_33 = arith.constant 0 : index
      %c0_34 = arith.constant 0 : index
      %51 = vector.load %arg11[%c0_33, %c0_34] : memref<8x1xf32, #tpu.memory_space<vmem>>, vector<8x1xf32>
      %c0_35 = arith.constant 0 : index
      %c0_36 = arith.constant 0 : index
      %52 = vector.load %arg10[%c0_35, %c0_36] : memref<8x1xf32, #tpu.memory_space<vmem>>, vector<8x1xf32>
      %53 = arith.divf %51, %52 : vector<8x1xf32>
      %cst_37 = arith.constant 9.99999997E-7 : f32
      %54 = vector.broadcast %cst_37 : f32 to vector<8x1xf32>
      %55 = arith.addf %53, %54 : vector<8x1xf32>
      %56 = math.log %55 : vector<8x1xf32>
      %cst_38 = arith.constant 0.000000e+00 : f32
      %57 = vector.broadcast %cst_38 : f32 to vector<8x1xf32>
      %58 = arith.subf %57, %56 : vector<8x1xf32>
      %c0_39 = arith.constant 0 : index
      %c0_40 = arith.constant 0 : index
      %59 = vector.load %arg8[%c0_39, %c0_40] : memref<8x1xf32, #tpu.memory_space<vmem>>, vector<8x1xf32>
      tpu.vector_store %arg8[%c0_39, %c0_40], %58 {strides = array<i32>} : memref<8x1xf32, #tpu.memory_space<vmem>>, vector<8x1xf32>,
    } else {
    }
    return
  }
  func.func @transform_0(%arg0: i32, %arg1: i32) -> (i32, i32) {
    %c0_i32 = arith.constant 0 : i32
    %c0_i32_0 = arith.constant 0 : i32
    return %arg0, %c0_i32 : i32, i32
  }
  func.func @transform_1(%arg0: i32, %arg1: i32) -> (i32, i32) {
    %c0_i32 = arith.constant 0 : i32
    %c0_i32_0 = arith.constant 0 : i32
    return %arg0, %c0_i32 : i32, i32
  }
  func.func @transform_2(%arg0: i32, %arg1: i32) -> (i32, i32) {
    %c0_i32 = arith.constant 0 : i32
    %c0_i32_0 = arith.constant 0 : i32
    return %arg0, %c0_i32 : i32, i32
  }
  func.func @transform_3(%arg0: i32, %arg1: i32) -> (i32, i32) {
    %c0_i32 = arith.constant 0 : i32
    %c0_i32_0 = arith.constant 0 : i32
    return %c0_i32, %arg1 : i32, i32
  }
  func.func @transform_4(%arg0: i32, %arg1: i32) -> (i32, i32) {
    %c0_i32 = arith.constant 0 : i32
    %c0_i32_0 = arith.constant 0 : i32
    return %c0_i32, %arg1 : i32, i32
  }
  func.func @transform_5(%arg0: i32, %arg1: i32) -> (i32, i32) {
    %c0_i32 = arith.constant 0 : i32
    %c0_i32_0 = arith.constant 0 : i32
    return %c0_i32, %arg1 : i32, i32
  }
  func.func @transform_6(%arg0: i32, %arg1: i32) -> (i32, i32) {
    %c0_i32 = arith.constant 0 : i32
    %c0_i32_0 = arith.constant 0 : i32
    return %arg0, %c0_i32 : i32, i32
  }
}

</mosaic_0001>

<bundles_post_ra>
// kernel: tpu_custom_call.1
= control target key start
LH: loop header
LB: loop body
LE: loop exit
PB: predicated region body
PF: predicated region fallthrough
CT: control target
= control target key end

     0   :  { %11 = vsyncpa [#allocation6], 0  ;;  %s808_s21 = smov [#allocation5]   ;;  %s914_s0 = inlined_call_operand.vmem [shape: f32[8,32], index: 0, kind: input, shape index: {}]   ;;  %s915_s1 = inlined_call_operand.vmem [shape: f32[8,1], index: 1, kind: input, shape index: {}]   ;;  %s916_s2 = inlined_call_operand.vmem [shape: s32[8,1], index: 2, kind: input, shape index: {}]   ;;  %s917_s3 = inlined_call_operand.hbm [shape: f32[32,128], index: 3, kind: input, shape index: {}]   ;;  %s918_s4 = inlined_call_operand.vmem [shape: f32[1,128], index: 4, kind: input, shape index: {}]   ;;  %s919_s5 = inlined_call_operand.vmem [shape: s32[1,128], index: 5, kind: input, shape index: {}]   ;;  %s920_s6 = inlined_call_operand.vmem [shape: f32[8,1], index: 6, kind: output, shape index: {}]  }
   0x1   :  { %s23_s22 = sshll.u32 %s808_s21, 4  ;;  %s784_s25 = scalar_lea.hbm %s917_s3, 512  ;;  %s24_s22 = int_to_ptr.vmem [resolvable:$true] %s23_s22 }
   0x2   :  { %p785_p0 = scmp.ne.s32.totalorder %s917_s3, %s784_s25  ;;  %p788_p1 = scmp.lt.u32.totalorder %s784_s25, %s917_s3 }
   0x4   :  { %p790_p2 = pnand %p788_p1, %p785_p0 }
   0x6   :  { %793 = shalt.err (!%p790_p2)
}
   0x7   :  { %s794_s30 = scalar_lea.vmem %s24_s22, 512  ;;  %p799_p4 = scmp.lt.s32.totalorder %s24_s22, %s24_s22 }
   0x8   :  { %p795_p3 = scmp.ne.s32.totalorder %s24_s22, %s794_s30  ;;  %p800_p5 = scmp.lt.s32.totalorder %s794_s30, %s794_s30 }
   0xa   :  { %p801_p6 = por %p800_p5, %p799_p4 }
   0xc   :  { %p802_p7 = pnand %p801_p6, %p795_p3 }
   0xe   :  { %805 = shalt.err (!%p802_p7)
}
   0xf   :  { %s809_s7 = smov 128   ;;  %s810_s8 = smov 8  }
  0x10   :  { %29 = dma.hbm_to_vmem [thread:$0]  %s917_s3, 512, %s24_s22, [#allocation6], %s809_s7, %s809_s7, %s810_s8  }
  0x11   :  { %806 = dma.done.wait [#allocation6], 512  }
  0x12   :  { %807 = vsyncadd [#allocation6], 4294966784  ;;  %v811_v0 = vmov 0.0|0.0   ;;  %vm812_vm0 = vmmov 0   ;;  %v813_v1 = vmov 0.0   ;;  %v814_v2 = vmov 0  }
  0x13   :  { %719 = vmatprep.subr.bf16.mxu1 %v811_v0  ;;  %737 = vmatprep.subr.bf16.mxu0 %v811_v0  ;;  %vm50_vm1 = vcmask 261120   ;;  %v46_v3 = vld [vmem:[#allocation5] sm:$0xff]  ;;  %v47_v4 = vld [vmem:[#allocation5 + $0x8] sm:$0xff]  ;;  %v48_v5 = vld [vmem:[#allocation5 + $0x10] sm:$0xff]  ;;  %vm41_vm2 = vcmask 7168   ;;  %v815_v43 = vmov -inf  }
  0x14   :  { %661 = vmatprep.mubr.msk.f32.mxu1 %vm812_vm0, %v813_v1  ;;  %694 = vmatprep.mubr.msk.f32.mxu0 %vm812_vm0, %v813_v1  ;;  %v55_v6 = vand.u32 4294901760, %v46_v3  ;;  %v58_v7 = vand.u32 4294901760, %v47_v4  ;;  %v49_v8 = vld [vmem:[#allocation5 + $0x18] sm:$0xff]  ;;  %v61_v9 = vand.u32 4294901760, %v48_v5  ;;  %v45_v10 = vld [vmem:[%s914_s0] sm:$0xff]  ;;  %42 = vst.msk [vmem:[#allocation2] sm:$0xff] %vm41_vm2, %v815_v43 }
  0x15   :  { %772 = vset.pattern.permute.xlu0 %v814_v2  ;;  %773 = vset.pattern.permute.xlu1 %v814_v2  ;;  %v539_v11 = vld [vmem:[%s915_s1] sm:$0xff]  ;;  %v64_v12 = vand.u32 4294901760, %v49_v8  ;;  %v52_v13 = vsel %vm50_vm1, %v45_v10, 0  ;;  %43 = vst.msk [vmem:[#allocation3] sm:$0xff] %vm41_vm2, %v813_v1  ;;  %44 = vst.msk [vmem:[#allocation4] sm:$0xff] %vm41_vm2, %v813_v1 }
  0x16   :  { %543 = vperm.xlu0 %772, %v539_v11   ;;  %v720_v14 = vpack.c.bf16 %v58_v7, %v55_v6  ;;  %v135_v15 = vsub.f32 %v46_v3, %v55_v6  ;;  %v142_v16 = vsub.f32 %v47_v4, %v58_v7  ;;  %v149_v17 = vsub.f32 %v48_v5, %v61_v9  ;;  %v621_v45 = vld [vmem:[%s918_s4] ss:$0 sm:$0xff] }
  0x17   :  { %v156_v18 = vsub.f32 %v49_v8, %v64_v12  ;;  %v123_v19 = vand.u32 4294901760, %v52_v13  ;;  %v723_v20 = vpack.c.bf16 %v64_v12, %v61_v9  ;;  %v622_v5 = vld [vmem:[%s919_s5] ss:$0 sm:$0xff] }
  0x18   :  { %721 = vmatpush3.bf16.msra.mxu1 %v720_v14  ;;  %739 = vmatpush3.bf16.msra.mxu0 %v720_v14  ;;  %v136_v21 = vand.u32 4294901760, %v135_v15  ;;  %v143_v22 = vand.u32 4294901760, %v142_v16  ;;  %v150_v23 = vand.u32 4294901760, %v149_v17  ;;  %v732_v41 = vpack.c.bf16 %v142_v16, %v135_v15 }
  0x19   :  { %722 = vmatprep.subr.bf16.mxu1 %v811_v0  ;;  %740 = vmatprep.subr.bf16.mxu0 %v811_v0  ;;  %v124_v24 = vsub.f32 %v52_v13, %v123_v19  ;;  %v157_v25 = vand.u32 4294901760, %v156_v18  ;;  %v735_v42 = vpack.c.bf16 %v156_v18, %v149_v17 }
  0x1a   :  { %v137_v26 = vsub.f32 %v135_v15, %v136_v21  ;;  %v144_v27 = vsub.f32 %v142_v16, %v143_v22  ;;  %v151_v28 = vsub.f32 %v149_v17, %v150_v23  ;;  %v744_v33 = vpack.c.bf16 %v143_v22, %v136_v21 }
  0x1b   :  { %v125_v29 = vand.u32 4294901760, %v124_v24  ;;  %v158_v30 = vsub.f32 %v156_v18, %v157_v25  ;;  %v747_v39 = vpack.c.bf16 %v157_v25, %v150_v23  ;;  %v564_v61 = vld [vmem:[#allocation2] sm:$0xff] }
  0x1c   :  { %724 = vmatpush3.bf16.msra.mxu1 %v723_v20  ;;  %742 = vmatpush3.bf16.msra.mxu0 %v723_v20  ;;  %v138_v31 = vand.u32 4294901760, %v137_v26  ;;  %v145_v32 = vand.u32 4294901760, %v144_v27  ;;  %v152_v36 = vand.u32 4294901760, %v151_v28  ;;  %v590_v11 = vld [vmem:[#allocation3] sm:$0xff]  ;;  %v597_v12 = vld [vmem:[#allocation4] sm:$0xff] }
  0x1d   :  { %v126_v34 = vsub.f32 %v124_v24, %v125_v29  ;;  %725 = vmatprep.subr.bf16.mxu1 %v811_v0  ;;  %743 = vmatprep.subr.bf16.mxu0 %v811_v0  ;;  %v159_v37 = vand.u32 4294901760, %v158_v30 }
  0x1e   :  { %v726_v35 = vpack.c.bf16 %v145_v32, %v138_v31 }
  0x1f   :  { %v127_v38 = vand.u32 4294901760, %v126_v34  ;;  %695 = vmatmul.mubr.f32.vlgmr.msra.gmra.mrb[0].mxu0 %v125_v29  ;;  %v729_v40 = vpack.c.bf16 %v159_v37, %v152_v36 }
  0x20   :  { %745 = vmatpush3.bf16.msra.mxu0 %v744_v33  ;;  %705 = vmatprep.mubr.msk.f32.mxu0 %vm812_vm0, %v813_v1 }
  0x21   :  { %662 = vmatmul.mubr.f32.vlgmr.msra.gmra.mrb[0].mxu1 %v127_v38  ;;  %746 = vmatprep.subr.bf16.mxu0 %v811_v0 }
  0x22   :  { %727 = vmatpush3.bf16.msra.mxu1 %v726_v35  ;;  %672 = vmatprep.mubr.msk.f32.mxu1 %vm812_vm0, %v813_v1 }
  0x23   :  { %728 = vmatprep.subr.bf16.mxu1 %v811_v0 }
  0x24   :  { %748 = vmatpush3.bf16.msra.mxu0 %v747_v39 }
  0x25   :  { %749 = vmatprep.subr.bf16.mxu0 %v811_v0 }
  0x26   :  { %730 = vmatpush3.bf16.msra.mxu1 %v729_v40 }
  0x27   :  { %731 = vmatprep.subr.bf16.mxu1 %v811_v0  ;;  %706 = vmatmul.mubr.f32.vlgmr.msra.gmra.mrb[0].mxu0 %v123_v19 }
  0x28   :  { %751 = vmatpush3.bf16.msra.mxu0 %v720_v14  ;;  %716 = vmatprep.mubr.msk.f32.mxu0 %vm812_vm0, %v813_v1 }
  0x29   :  { %673 = vmatmul.mubr.f32.vlgmr.msra.gmra.mrb[0].mxu1 %v123_v19  ;;  %752 = vmatprep.subr.bf16.mxu0 %v811_v0 }
  0x2a   :  { %733 = vmatpush3.bf16.msra.mxu1 %v732_v41  ;;  %683 = vmatprep.mubr.msk.f32.mxu1 %vm812_vm0, %v813_v1  ;;  %v579_v1 = vld [vmem:[%s916_s2] sm:$0xff] }
  0x2b   :  { %734 = vmatprep.subr.bf16.mxu1 %v811_v0 }
  0x2c   :  { %754 = vmatpush3.bf16.msra.mxu0 %v723_v20 }
  0x2e   :  { %736 = vmatpush3.bf16.msra.mxu1 %v735_v42 }
  0x2f   :  { %717 = vmatmul.mubr.f32.vlgmr.msra.gmra.mrb[0].mxu0 %v123_v19 }
  0x31   :  { %684 = vmatmul.mubr.f32.vlgmr.msra.gmra.mrb[0].mxu1 %v124_v24 }
  0x95   :  { %v544_v46 = vpop.permute.xlu0 %543 }
  0x96   :  { %v552_v51 = vadd.f32 %v621_v45, %v544_v46 }
 0x102   :  { %v535_v44 = vpop.f32.mrb[0].mxu0 }
 0x103   :  { %v718_v47 = vpop.f32.mrb[1].mxu0 }
 0x104   :  { %v300_v48 = vpop.f32.mrb[0].mxu1 }
 0x105   :  { %v755_v49 = vadd.f32 %v535_v44, %v300_v48  ;;  %v685_v50 = vpop.f32.mrb[1].mxu1 }
 0x107   :  { %v553_v52 = vmul.f32 2.0, %v755_v49 }
 0x109   :  { %v554_v53 = vsub.f32 %v552_v51, %v553_v52 }
 0x10b   :  { %v555_v54 = vmax.f32 %v554_v53, 0.0 }
 0x10d   :  { %774 = vrsqrt.f32 %v555_v54  ;;  %vm558_vm3 = vcmp.eq.f32.partialorder %v555_v54, inf  ;;  %v561_v57 = vand.u32 2147483648, %v555_v54  ;;  %vm560_vm4 = vcmp.eq.f32.partialorder %v555_v54, 0.0 }
 0x117   :  { %v775_v55 = vpop.eup %774 }
 0x118   :  { %v557_v56 = vmul.f32 %v775_v55, %v555_v54 }
 0x11a   :  { %v559_v58 = vsel %vm558_vm3, %v555_v54, %v557_v56 }
 0x11b   :  { %v562_v59 = vsel %vm560_vm4, %v561_v57, %v559_v58 }
 0x11c   :  { %v563_v60 = vsub.f32 0.0, %v562_v59 }
 0x11e   :  { %565 = vmax.xlane.f32.xlu0 %v563_v60 }
 0x1ab   :  { %v566_v62 = vpop.xlane.xlu0 %565 }
 0x1ac   :  { %v567_v63 = vmax.f32 %v564_v61, %v566_v62 }
 0x1ae   :  { %v568_v0 = vsub.f32 %v564_v61, %v567_v63  ;;  %603 = vst.msk [vmem:[#allocation2] sm:$0xff] %vm41_vm2, %v567_v63  ;;  %573 = vperm.xlu1 %773, %v567_v63  }
 0x1b0   :  { %v569_v9 = vmul.f32 1.442695, %v568_v0 }
 0x1b2   :  { %582 = vperm.xlu1 %773, %v579_v1  }
 0x22d   :  { %v574_v2 = vpop.permute.xlu1 %573 }
 0x22e   :  { %v576_v3 = vsub.f32 %v563_v60, %v574_v2 }
 0x230   :  { %v577_v4 = vmul.f32 1.442695, %v576_v3 }
 0x231   :  { %v583_v6 = vpop.permute.xlu1 %582 }
 0x232   :  { %776 = vpow2.f32 %v577_v4  ;;  %vm588_vm5 = vcmp.eq.s32.totalorder %v583_v6, %v622_v5 }
 0x233   :  { %778 = vpow2.f32 %v569_v9 }
 0x23c   :  { %v777_v7 = vpop.eup %776 }
 0x23d   :  { %592 = vadd.xlane.f32.xlu1 %v777_v7  ;;  %v589_v8 = vsel %vm588_vm5, %v777_v7, 0.0  ;;  %v779_v10 = vpop.eup %778 }
 0x23e   :  { %599 = vadd.xlane.f32.xlu0 %v589_v8  ;;  %v591_v13 = vmul.f32 %v779_v10, %v590_v11  ;;  %v598_v15 = vmul.f32 %v779_v10, %v597_v12 }
 0x2ca   :  { %v593_v14 = vpop.xlane.xlu1 %592 }
 0x2cb   :  { %v594_v16 = vadd.f32 %v593_v14, %v591_v13  ;;  %v600_v17 = vpop.xlane.xlu0 %599 }
 0x2cc   :  { %v601_v18 = vadd.f32 %v600_v17, %v598_v15 }
 0x2cd   :  { %596 = vst.msk [vmem:[#allocation3] sm:$0xff] %vm41_vm2, %v594_v16 }
 0x2ce   :  { %602 = vst.msk [vmem:[#allocation4] sm:$0xff] %vm41_vm2, %v601_v18 }
 0x2d4   :  { %v608_v19 = vld [vmem:[#allocation3] sm:$0xff] }
 0x2d5   :  { %780 = vrcp.f32 %v608_v19  ;;  %v607_v21 = vld [vmem:[#allocation4] sm:$0xff] }
 0x2df   :  { %v781_v20 = vpop.eup %780 }
 0x2e0   :  { %v610_v22 = vmul.f32 %v781_v20, %v607_v21 }
 0x2e2   :  { %v611_v23 = vadd.f32 1e-06, %v610_v22 }
 0x2e4   :  { %782 = vlog2.f32 %v611_v23 }
 0x2ee   :  { %v783_v24 = vpop.eup %782 }
 0x2ef   :  { %v613_v25 = vmul.f32 0.6931472, %v783_v24 }
 0x2f1   :  { %v614_v26 = vsub.f32 0.0, %v613_v25 }
 0x2f3   :  { %615 = vst.msk [vmem:[%s920_s6] sm:$0xff] %vm41_vm2, %v614_v26 }
 0x2f4   :  { %620 = vsyncpa [#allocation6], 1 }

</bundles_post_ra>
